<compile_context>
chip_gen: v5e
topology: v5e:2x2
jax: 0.10.0
libtpu: 0.0.40
codegen_flags: <defaults>
</compile_context>

<pallas_src>
import functools

import jax
import jax.numpy as jnp
from jax.experimental import pallas as pl
from jax.experimental.pallas import tpu as pltpu

LANE = 128


# --------------------------------------------------------------------------- #
# helpers
# --------------------------------------------------------------------------- #
def _round_up(n, m):
    return ((n + m - 1) // m) * m


def _pad2(a, rows, cols):
    return jnp.pad(a, ((0, rows - a.shape[0]), (0, cols - a.shape[1])))


def _vmem_limit_bytes(default=32 << 20):
    """Generation-aware scoped-VMEM limit (~48 MiB on v7x, ~96 MiB on v5e/v6e)."""
    try:
        cap = int(pltpu.get_tpu_info().vmem_capacity_bytes)
        if cap >= (32 << 20):
            return (cap * 3) // 4
    except Exception:
        pass
    return default


def _choose_batch_tile(batch, max_tile=512):
    """Right-size the batch tile.

    Small B: a single grid step on a round_up(B, 16) tile (<=15 zero rows).
    Large B: ~max_tile rows per step with an EVEN step count (so v7x's two
    TensorCores stay balanced) achieved by shrinking the tile, not by padding.
    """
    if batch <= max_tile:
        return _round_up(batch, 16)
    steps = -(-batch // max_tile)          # cdiv
    if steps % 2:
        steps += 1                         # even #steps without extra zero rows
    return _round_up(-(-batch // steps), 16)


# --------------------------------------------------------------------------- #
# kernel
# --------------------------------------------------------------------------- #
def _make_mlp_kernel(n_hidden):
    """Fused (n_hidden Linear+ReLU) + final Linear for one batch tile.

    Refs: x, (w1, b1), ..., (wN, bN), out.  Matmuls in bf16 on the MXU with
    f32 accumulation; bias-add / ReLU on the f32 accumulator.  Dropout == id.
    """
    n_layers = n_hidden + 1

    def kernel(x_ref, *refs):
        o_ref = refs[-1]
        wb = refs[:-1]
        h = x_ref[...]                                     # f32 tile from HBM
        for li in range(n_layers):
            w_ref = wb[2 * li]
            b_ref = wb[2 * li + 1]
            h = jnp.dot(h.astype(w_ref.dtype), w_ref[...],
                        preferred_element_type=jnp.float32)
            h = h + b_ref[...]
            if li < n_hidden:
                h = jnp.maximum(h, 0.0)                    # ReLU (Dropout = id)
        o_ref[...] = h.astype(o_ref.dtype)                 # lane-dense bf16 store

    return kernel


# --------------------------------------------------------------------------- #
# parameter prep (once, off the hot path)
# --------------------------------------------------------------------------- #
def prepare_params(params, compute_dtype=jnp.bfloat16):
    """Pad feature dims to 128 lanes and cast weights to the MXU dtype once.

    Layer-1's K dim stays UNpadded so x can stream straight from HBM as f32
    with a full-extent last dim (no wrapper pad/cast pass over x).
    Biases stay f32 (added on the f32 accumulator), shaped (1, dim_pad).
    """
    n_layers = sum(1 for k in params if k.startswith("w"))
    prepped = {}
    for li in range(1, n_layers + 1):
        w = params[f"w{li}"]
        b = params[f"b{li}"]
        k, m = w.shape
        k_p = k if li == 1 else _round_up(k, LANE)
        m_p = _round_up(m, LANE)
        prepped[f"w{li}"] = _pad2(w, k_p, m_p).astype(compute_dtype)
        prepped[f"b{li}"] = _pad2(b.reshape(1, m), 1, m_p).astype(jnp.float32)
    return prepped


# --------------------------------------------------------------------------- #
# forward wrapper
# --------------------------------------------------------------------------- #
def mlp_forward(x, prepped, out_dim, *, max_batch_tile=512,
                out_dtype=jnp.bfloat16, single_buffer_resident=None):
    """Run the fused MLP kernel.

    x:        (B, input_dim) float32 (streamed untouched; cast in-kernel)
    prepped:  output of prepare_params (padded/cast weights + biases)
    out_dim:  true (unpadded) output feature count
    """
    B, in_dim = x.shape
    n_layers = sum(1 for k in prepped if k.startswith("w"))
    assert prepped["w1"].shape[0] == in_dim

    tile = _choose_batch_tile(B, max_batch_tile)
    grid_b = pl.cdiv(B, tile)
    B_pad = grid_b * tile
    if B_pad != B:
        x = jnp.pad(x, ((0, B_pad - B), (0, 0)))           # rows only, no cast

    out_p = prepped[f"w{n_layers}"].shape[1]
    resident_bytes = sum(int(v.size) * v.dtype.itemsize for v in prepped.values())
    vmem_limit = _vmem_limit_bytes()

    # Single-buffer the constant-index (resident) blocks only when doubling
    # them would actually pressure VMEM (large hidden dims, multi-step grid).
    if single_buffer_resident is None:
        single_buffer_resident = (grid_b > 1) and (resident_bytes > vmem_limit // 8)

    def resident_spec(shape):
        if single_buffer_resident:
            return pl.BlockSpec(shape, lambda i: (0, 0),
                                pipeline_mode=pl.Buffered(1))
        return pl.BlockSpec(shape, lambda i: (0, 0))

    in_specs = [pl.BlockSpec((tile, in_dim), lambda i: (i, 0))]   # x streams
    operands = [x]
    for li in range(1, n_layers + 1):
        w = prepped[f"w{li}"]
        b = prepped[f"b{li}"]
        in_specs.append(resident_spec(w.shape))                   # resident W
        in_specs.append(resident_spec(b.shape))                   # resident b
        operands.append(w)
        operands.append(b)

    out_spec = pl.BlockSpec((tile, out_p), lambda i: (i, 0))      # lane-dense bf16

    flops = 0
    for li in range(1, n_layers + 1):
        k_p, m_p = prepped[f"w{li}"].shape
        flops += 2 * B_pad * k_p * m_p
    bytes_accessed = (B_pad * in_dim * x.dtype.itemsize
                      + resident_bytes
                      + B_pad * out_p * jnp.dtype(out_dtype).itemsize)

    out_padded = pl.pallas_call(
        _make_mlp_kernel(n_layers - 1),
        out_shape=jax.ShapeDtypeStruct((B_pad, out_p), out_dtype),
        grid_spec=pl.GridSpec(grid=(grid_b,), in_specs=in_specs,
                              out_specs=out_spec),
        compiler_params=pltpu.CompilerParams(
            dimension_semantics=("parallel",),
            vmem_limit_bytes=vmem_limit),
        cost_estimate=pl.CostEstimate(
            flops=int(flops), transcendentals=0,
            bytes_accessed=int(bytes_accessed)),
    )(*operands)

    # Slice padded rows / columns back off (output stays bf16).
    return out_padded[:B, :out_dim]


# --------------------------------------------------------------------------- #
# init + reference
# --------------------------------------------------------------------------- #
def init_mlp_params(key, input_dim, hidden_layers, output_dim):
    """PyTorch nn.Linear-style init U[-1/sqrt(fan_in), 1/sqrt(fan_in)].
    Weights stored already transposed to (in_features, out_features)."""
    dims = [input_dim] + list(hidden_layers) + [output_dim]
    params = {}
    for li in range(len(dims) - 1):
        fan_in, fan_out = dims[li], dims[li + 1]
        key, kw, kb = jax.random.split(key, 3)
        bound = 1.0 / jnp.sqrt(jnp.float32(fan_in))
        params[f"w{li + 1}"] = jax.random.uniform(
            kw, (fan_in, fan_out), jnp.float32, -bound, bound)
        params[f"b{li + 1}"] = jax.random.uniform(
            kb, (fan_out,), jnp.float32, -bound, bound)
    return params


def mlp_reference(x, params):
    """Pure-JAX f32 reference (Dropout = identity)."""
    n = sum(1 for k in params if k.startswith("w"))
    h = x
    for li in range(1, n + 1):
        h = jnp.dot(h, params[f"w{li}"]) + params[f"b{li}"]
        if li < n:
            h = jnp.maximum(h, 0.0)
    return h


# --------------------------------------------------------------------------- #
# demo
# --------------------------------------------------------------------------- #
if __name__ == "__main__":
    # Module config: MLP(input_dim=16, hidden_layers=[32, 32], output_dim=4, dropout_rate=0.1)
    input_dim = 16
    hidden_layers = [32, 32]
    output_dim = 4
    batch = 8

    key = jax.random.PRNGKey(0)
    key, kx = jax.random.split(key)
    x = jax.random.normal(kx, (batch, input_dim), dtype=jnp.float32)
    params = init_mlp_params(key, input_dim, hidden_layers, output_dim)

    prepped = prepare_params(params)                    # once, off the hot path
    fwd = jax.jit(functools.partial(mlp_forward, out_dim=output_dim))

    # --- small batch: single right-sized grid step ---
    out = jax.block_until_ready(fwd(x, prepped))
    assert out.shape == (batch, output_dim)
    ref = mlp_reference(x, params)
    assert jnp.allclose(out.astype(jnp.float32), ref, atol=3e-2, rtol=3e-2), \
        "small-batch mismatch vs f32 reference"

    # --- larger batch: multi-step streaming grid (exercises pipelining) ---
    xb = jax.random.normal(jax.random.PRNGKey(1), (1000, input_dim), jnp.float32)
    outb = jax.block_until_ready(fwd(xb, prepped))
    assert outb.shape == (1000, output_dim)
    refb = mlp_reference(xb, params)
    assert jnp.allclose(outb.astype(jnp.float32), refb, atol=3e-2, rtol=3e-2), \
        "large-batch mismatch vs f32 reference"

    print("KERNEL_OK")
</pallas_src>

<mosaic_0001>
module attributes {stable_mosaic.version = 11 : i64} {
  func.func @kernel(%arg0: i32, %arg1: memref<16x16xf32, #tpu.memory_space<vmem>>, %arg2: memref<16x128xbf16, #tpu.memory_space<vmem>>, %arg3: memref<1x128xf32, #tpu.memory_space<vmem>>, %arg4: memref<128x128xbf16, #tpu.memory_space<vmem>>, %arg5: memref<1x128xf32, #tpu.memory_space<vmem>>, %arg6: memref<128x128xbf16, #tpu.memory_space<vmem>>, %arg7: memref<1x128xf32, #tpu.memory_space<vmem>>, %arg8: memref<16x128xbf16, #tpu.memory_space<vmem>>) attributes {dimension_semantics = [#tpu.dimension_semantics<parallel>], iteration_bounds = array<i64: 1>, scalar_prefetch = 0 : i64, scratch_operands = 0 : i64, tpu.core_type = #tpu.core_type<tc>, window_params = [{transform_indices = @transform_0, window_bounds = array<i64: 16, 16>}, {pipeline_mode = #tpu.pipeline_mode<synchronous>, transform_indices = @transform_1, window_bounds = array<i64: 16, 128>}, {pipeline_mode = #tpu.pipeline_mode<synchronous>, transform_indices = @transform_2, window_bounds = array<i64: 1, 128>}, {pipeline_mode = #tpu.pipeline_mode<synchronous>, transform_indices = @transform_3, window_bounds = array<i64: 128, 128>}, {pipeline_mode = #tpu.pipeline_mode<synchronous>, transform_indices = @transform_4, window_bounds = array<i64: 1, 128>}, {pipeline_mode = #tpu.pipeline_mode<synchronous>, transform_indices = @transform_5, window_bounds = array<i64: 128, 128>}, {pipeline_mode = #tpu.pipeline_mode<synchronous>, transform_indices = @transform_6, window_bounds = array<i64: 1, 128>}, {transform_indices = @transform_7, window_bounds = array<i64: 16, 128>}]} {
    %c0 = arith.constant 0 : index
    %c0_0 = arith.constant 0 : index
    %0 = vector.load %arg1[%c0, %c0_0] : memref<16x16xf32, #tpu.memory_space<vmem>>, vector<16x16xf32>
    %1 = arith.truncf %0 : vector<16x16xf32> to vector<16x16xbf16>
    %c0_1 = arith.constant 0 : index
    %c0_2 = arith.constant 0 : index
    %2 = vector.load %arg2[%c0_1, %c0_2] : memref<16x128xbf16, #tpu.memory_space<vmem>>, vector<16x128xbf16>
    %cst = arith.constant dense<0.000000e+00> : vector<16x128xf32>
    %3 = tpu.matmul %1, %2, %cst {dimension_numbers = #tpu.dot_dimension_numbers<[1], [0], [0], [1], [0, 0, 1, 1], [], []>} : vector<16x16xbf16>, vector<16x128xbf16>, vector<16x128xf32> -> vector<16x128xf32>
    %c0_3 = arith.constant 0 : index
    %c0_4 = arith.constant 0 : index
    %4 = vector.load %arg3[%c0_3, %c0_4] : memref<1x128xf32, #tpu.memory_space<vmem>>, vector<1x128xf32>
    %5 = vector.broadcast %4 : vector<1x128xf32> to vector<16x128xf32>
    %6 = arith.addf %3, %5 : vector<16x128xf32>
    %cst_5 = arith.constant 0.000000e+00 : f32
    %7 = vector.broadcast %cst_5 : f32 to vector<16x128xf32>
    %8 = arith.maximumf %6, %7 : vector<16x128xf32>
    %9 = arith.truncf %8 : vector<16x128xf32> to vector<16x128xbf16>
    %c0_6 = arith.constant 0 : index
    %c0_7 = arith.constant 0 : index
    %10 = vector.load %arg4[%c0_6, %c0_7] : memref<128x128xbf16, #tpu.memory_space<vmem>>, vector<128x128xbf16>
    %cst_8 = arith.constant dense<0.000000e+00> : vector<16x128xf32>
    %11 = tpu.matmul %9, %10, %cst_8 {dimension_numbers = #tpu.dot_dimension_numbers<[1], [0], [0], [1], [0, 0, 1, 1], [], []>} : vector<16x128xbf16>, vector<128x128xbf16>, vector<16x128xf32> -> vector<16x128xf32>
    %c0_9 = arith.constant 0 : index
    %c0_10 = arith.constant 0 : index
    %12 = vector.load %arg5[%c0_9, %c0_10] : memref<1x128xf32, #tpu.memory_space<vmem>>, vector<1x128xf32>
    %13 = vector.broadcast %12 : vector<1x128xf32> to vector<16x128xf32>
    %14 = arith.addf %11, %13 : vector<16x128xf32>
    %cst_11 = arith.constant 0.000000e+00 : f32
    %15 = vector.broadcast %cst_11 : f32 to vector<16x128xf32>
    %16 = arith.maximumf %14, %15 : vector<16x128xf32>
    %17 = arith.truncf %16 : vector<16x128xf32> to vector<16x128xbf16>
    %c0_12 = arith.constant 0 : index
    %c0_13 = arith.constant 0 : index
    %18 = vector.load %arg6[%c0_12, %c0_13] : memref<128x128xbf16, #tpu.memory_space<vmem>>, vector<128x128xbf16>
    %cst_14 = arith.constant dense<0.000000e+00> : vector<16x128xf32>
    %19 = tpu.matmul %17, %18, %cst_14 {dimension_numbers = #tpu.dot_dimension_numbers<[1], [0], [0], [1], [0, 0, 1, 1], [], []>} : vector<16x128xbf16>, vector<128x128xbf16>, vector<16x128xf32> -> vector<16x128xf32>
    %c0_15 = arith.constant 0 : index
    %c0_16 = arith.constant 0 : index
    %20 = vector.load %arg7[%c0_15, %c0_16] : memref<1x128xf32, #tpu.memory_space<vmem>>, vector<1x128xf32>
    %21 = vector.broadcast %20 : vector<1x128xf32> to vector<16x128xf32>
    %22 = arith.addf %19, %21 : vector<16x128xf32>
    %23 = arith.truncf %22 : vector<16x128xf32> to vector<16x128xbf16>
    %c0_17 = arith.constant 0 : index
    %c0_18 = arith.constant 0 : index
    %24 = vector.load %arg8[%c0_17, %c0_18] : memref<16x128xbf16, #tpu.memory_space<vmem>>, vector<16x128xbf16>
    tpu.vector_store %arg8[%c0_17, %c0_18], %23 {strides = array<i32>} : memref<16x128xbf16, #tpu.memory_space<vmem>>, vector<16x128xbf16>,
    return
  }
  func.func @transform_0(%arg0: i32) -> (i32, i32) {
    %c0_i32 = arith.constant 0 : i32
    %c0_i32_0 = arith.constant 0 : i32
    return %arg0, %c0_i32 : i32, i32
  }
  func.func @transform_1(%arg0: i32) -> (i32, i32) {
    %c0_i32 = arith.constant 0 : i32
    %c0_i32_0 = arith.constant 0 : i32
    %c0_i32_1 = arith.constant 0 : i32
    return %c0_i32, %c0_i32_0 : i32, i32
  }
  func.func @transform_2(%arg0: i32) -> (i32, i32) {
    %c0_i32 = arith.constant 0 : i32
    %c0_i32_0 = arith.constant 0 : i32
    %c0_i32_1 = arith.constant 0 : i32
    return %c0_i32, %c0_i32_0 : i32, i32
  }
  func.func @transform_3(%arg0: i32) -> (i32, i32) {
    %c0_i32 = arith.constant 0 : i32
    %c0_i32_0 = arith.constant 0 : i32
    %c0_i32_1 = arith.constant 0 : i32
    return %c0_i32, %c0_i32_0 : i32, i32
  }
  func.func @transform_4(%arg0: i32) -> (i32, i32) {
    %c0_i32 = arith.constant 0 : i32
    %c0_i32_0 = arith.constant 0 : i32
    %c0_i32_1 = arith.constant 0 : i32
    return %c0_i32, %c0_i32_0 : i32, i32
  }
  func.func @transform_5(%arg0: i32) -> (i32, i32) {
    %c0_i32 = arith.constant 0 : i32
    %c0_i32_0 = arith.constant 0 : i32
    %c0_i32_1 = arith.constant 0 : i32
    return %c0_i32, %c0_i32_0 : i32, i32
  }
  func.func @transform_6(%arg0: i32) -> (i32, i32) {
    %c0_i32 = arith.constant 0 : i32
    %c0_i32_0 = arith.constant 0 : i32
    %c0_i32_1 = arith.constant 0 : i32
    return %c0_i32, %c0_i32_0 : i32, i32
  }
  func.func @transform_7(%arg0: i32) -> (i32, i32) {
    %c0_i32 = arith.constant 0 : i32
    %c0_i32_0 = arith.constant 0 : i32
    return %arg0, %c0_i32 : i32, i32
  }
}

</mosaic_0001>

<bundles_post_ra>
// kernel: mlp_forward.1
= control target key start
LH: loop header
LB: loop body
LE: loop exit
PB: predicated region body
PF: predicated region fallthrough
CT: control target
= control target key end

     0   :  { %12 = vsyncpa [#allocation3], 0  ;;  %s493_s0 = inlined_call_operand.vmem [shape: f32[16,16], index: 0, kind: input, shape index: {}]   ;;  %s494_s1 = inlined_call_operand.vmem [shape: bf16[16,128], index: 1, kind: input, shape index: {}]   ;;  %s495_s2 = inlined_call_operand.vmem [shape: f32[1,128], index: 2, kind: input, shape index: {}]   ;;  %s496_s3 = inlined_call_operand.hbm [shape: bf16[128,128], index: 3, kind: input, shape index: {}]   ;;  %s497_s4 = inlined_call_operand.vmem [shape: f32[1,128], index: 4, kind: input, shape index: {}]   ;;  %s498_s5 = inlined_call_operand.hbm [shape: bf16[128,128], index: 5, kind: input, shape index: {}]   ;;  %s499_s6 = inlined_call_operand.vmem [shape: f32[1,128], index: 6, kind: input, shape index: {}]   ;;  %s500_s7 = inlined_call_operand.vmem [shape: bf16[16,128], index: 7, kind: output, shape index: {}]  }
   0x1   :  { %s24_s26 = sshll.u32 %s496_s3, 4  ;;  %s25_s26 = int_to_ptr.hbm [resolvable:$true] %s24_s26 }
   0x2   :  { %13 = vsyncpa [#allocation5], 0  ;;  %s422_s27 = smov [#allocation2]   ;;  %s39_s8 = sshll.u32 %s498_s5, 4  ;;  %s40_s8 = int_to_ptr.hbm [resolvable:$true] %s39_s8 }
   0x3   :  { %s26_s28 = sshll.u32 %s422_s27, 4  ;;  %s423_s9 = smov 64   ;;  %s27_s28 = int_to_ptr.vmem [resolvable:$true] %s26_s28 }
   0x4   :  { %s424_s10 = smov 4   ;;  %s425_s11 = smov [#allocation4]  }
   0x5   :  { %32 = dma.hbm_to_vmem [thread:$0]  %s25_s26, 1024, %s27_s28, [#allocation3], %s423_s9, %s423_s9, %s424_s10  }
   0x6   :  { %s41_s12 = sshll.u32 %s425_s11, 4  ;;  %s42_s12 = int_to_ptr.vmem [resolvable:$true] %s41_s12 }
   0x7   :  { %47 = dma.hbm_to_vmem [thread:$0]  %s40_s8, 1024, %s42_s12, [#allocation5], %s423_s9, %s423_s9, %s424_s10  }
   0x8   :  { %418 = dma.done.wait [#allocation3], 1024  }
   0x9   :  { %419 = vsyncadd [#allocation3], 4294966272 }
   0xa   :  { %420 = dma.done.wait [#allocation5], 1024  }
   0xb   :  { %421 = vsyncadd [#allocation5], 4294966272  ;;  %v341_v0 = vld [vmem:[%s494_s1] sm:$0xff]  ;;  %v60_v2 = vld [vmem:[%s493_s0 + $0x8] sm:$0xff]  ;;  %vm74_vm0 = vcmask 130048  }
   0xc   :  { %v59_v1 = vld [vmem:[%s493_s0] sm:$0xff]  ;;  %v349_v4 = vld [vmem:[#allocation2 + $0x38] sm:$0xff]  ;;  %85 = vmatpush.bf16.msra.mxu0 %v341_v0  ;;  %v348_v5 = vld [vmem:[#allocation2 + $0x30] sm:$0xff] }
   0xd   :  { %v61_v3 = vpack.c.bf16 %v60_v2, %v59_v1  ;;  %163 = vmatpush.bf16.msra.mxu1 %v349_v4  ;;  %v347_v6 = vld [vmem:[#allocation2 + $0x28] sm:$0xff]  ;;  %v346_v7 = vld [vmem:[#allocation2 + $0x20] sm:$0xff]  ;;  %v345_v8 = vld [vmem:[#allocation2 + $0x18] sm:$0xff] }
   0xe   :  { %v344_v9 = vld [vmem:[#allocation2 + $0x10] sm:$0xff]  ;;  %v343_v10 = vld [vmem:[#allocation2 + $0x8] sm:$0xff]  ;;  %v342_v11 = vld [vmem:[#allocation2] sm:$0xff] }
   0xf   :  { %276 = vmatmul.msk.bf16.vlgmr.msra.gmra.mxu0 %vm74_vm0, %v61_v3  ;;  %v357_v12 = vld [vmem:[#allocation4 + $0x38] sm:$0xff]  ;;  %v356_v13 = vld [vmem:[#allocation4 + $0x30] sm:$0xff]  ;;  %v355_v14 = vld [vmem:[#allocation4 + $0x28] sm:$0xff] }
  0x10   :  { %248 = vmatpush.bf16.msra.mxu2 %v357_v12  ;;  %v354_v15 = vld [vmem:[#allocation4 + $0x20] sm:$0xff]  ;;  %v353_v24 = vld [vmem:[#allocation4 + $0x18] sm:$0xff]  ;;  %v352_v25 = vld [vmem:[#allocation4 + $0x10] sm:$0xff] }
  0x11   :  { %164 = vmatpush.bf16.msra.mxu1 %v348_v5  ;;  %v367_v17 = vld [vmem:[%s495_s2] ss:$0 sm:$0xff]  ;;  %v351_v26 = vld [vmem:[#allocation4 + $0x8] sm:$0xff] }
  0x12   :  { %v350_v27 = vld [vmem:[#allocation4] sm:$0xff] }
  0x13   :  { %v368_v29 = vld [vmem:[%s497_s4] ss:$0 sm:$0xff] }
  0x14   :  { %249 = vmatpush.bf16.msra.mxu2 %v356_v13  ;;  %v369_v37 = vld [vmem:[%s499_s6] ss:$0 sm:$0xff] }
  0x15   :  { %165 = vmatpush.bf16.msra.mxu1 %v347_v6 }
  0x18   :  { %250 = vmatpush.bf16.msra.mxu2 %v355_v14 }
  0x19   :  { %166 = vmatpush.bf16.msra.mxu1 %v346_v7 }
  0x1c   :  { %251 = vmatpush.bf16.msra.mxu2 %v354_v15 }
  0x1d   :  { %167 = vmatpush.bf16.msra.mxu1 %v345_v8 }
  0x20   :  { %252 = vmatpush.bf16.msra.mxu2 %v353_v24 }
  0x21   :  { %168 = vmatpush.bf16.msra.mxu1 %v344_v9 }
  0x24   :  { %253 = vmatpush.bf16.msra.mxu2 %v352_v25 }
  0x25   :  { %169 = vmatpush.bf16.msra.mxu1 %v343_v10 }
  0x28   :  { %254 = vmatpush.bf16.msra.mxu2 %v351_v26 }
  0x29   :  { %170 = vmatpush.bf16.msra.mxu1 %v342_v11 }
  0x2c   :  { %255 = vmatpush.bf16.msra.mxu2 %v350_v27 }
  0x8c   :  { %v87_v16 = vpop.f32.mrf.mxu0 }
  0x8d   :  { %v88_v18 = vadd.f32 %v367_v17, %v87_v16 }
  0x8f   :  { %v92_v21 = vmax.f32 %v88_v18, 0.0 }
  0x94   :  { %v89_v19 = vpop.f32.mrf.mxu0 }
  0x95   :  { %v90_v20 = vadd.f32 %v367_v17, %v89_v19 }
  0x97   :  { %v93_v22 = vmax.f32 %v90_v20, 0.0 }
  0x99   :  { %v94_v23 = vpack.c.bf16 %v93_v22, %v92_v21 }
  0x9b   :  { %171 = vmatmul.bf16.vlgmr.msra.gmra.mxu1 %v94_v23 }
 0x118   :  { %v172_v28 = vpop.f32.mrf.mxu1 }
 0x119   :  { %v173_v30 = vadd.f32 %v368_v29, %v172_v28 }
 0x11b   :  { %v177_v33 = vmax.f32 %v173_v30, 0.0 }
 0x120   :  { %v174_v31 = vpop.f32.mrf.mxu1 }
 0x121   :  { %v175_v32 = vadd.f32 %v368_v29, %v174_v31 }
 0x123   :  { %v178_v34 = vmax.f32 %v175_v32, 0.0 }
 0x125   :  { %v179_v35 = vpack.c.bf16 %v178_v34, %v177_v33 }
 0x127   :  { %256 = vmatmul.bf16.vlgmr.msra.gmra.mxu2 %v179_v35 }
 0x1aa   :  { %v257_v36 = vpop.f32.mrf.mxu2 }
 0x1ab   :  { %v258_v39 = vadd.f32 %v369_v37, %v257_v36 }
 0x1b2   :  { %v259_v38 = vpop.f32.mrf.mxu2 }
 0x1b3   :  { %v260_v40 = vadd.f32 %v369_v37, %v259_v38 }
 0x1b5   :  { %v361_v41 = vpack.c.bf16 %v260_v40, %v258_v39 }
 0x1b7   :  { %362 = vst [vmem:[%s500_s7] sm:$0xff] %v361_v41  }
 0x1b8   :  { %270 = vsyncpa [#allocation3], 1 }
 0x1b9   :  { %271 = vsyncpa [#allocation5], 1 }

</bundles_post_ra>
